<compile_context>
chip_gen: v7x
topology: tpu7x:2x2x1
jax: 0.10.0
libtpu: 0.0.40
codegen_flags: <defaults>
</compile_context>

<pallas_src>
import functools

import jax
import jax.numpy as jnp
from jax import lax
from jax.experimental import pallas as pl
from jax.experimental.pallas import tpu as pltpu

_EPS = 1e-5  # nn.BatchNorm1d default eps


# ----------------------------------------------------------------- kernel math

def _shifted_pm1(x_c, left_row, right_row, t, num_t):
    """x_c: (N, tL, C). Returns (x[l-1], x[l+1]) with zero padding at global edges."""
    dt = x_c.dtype
    lf = left_row * (t > 0).astype(dt)
    rf = right_row * (t < num_t - 1).astype(dt)
    x_prev = jnp.concatenate([lf, x_c[:, :-1, :]], axis=1)
    x_next = jnp.concatenate([x_c[:, 1:, :], rf], axis=1)
    return x_prev, x_next


def _accumulate_stats(p, t, y, sum_ref, ssq_ref):
    # Phase 0: single pass over y accumulating sum and sum-of-squares per channel.
    @pl.when((p == 0) & (t == 0))
    def _():
        sum_ref[...] = jnp.zeros(sum_ref.shape, sum_ref.dtype)
        ssq_ref[...] = jnp.zeros(ssq_ref.shape, ssq_ref.dtype)

    @pl.when(p == 0)
    def _():
        sum_ref[...] += jnp.sum(y, axis=0, keepdims=True)
        ssq_ref[...] += jnp.sum(y * y, axis=0, keepdims=True)


def _normalize_resample_store(p, sample_mode, N, tL, count, y,
                              g_ref, be_ref, o_ref, sum_ref, ssq_ref, z_scr):
    # Phase 1: BatchNorm (batch stats, biased var) + ELU + resample + store.
    @pl.when(p == 1)
    def _():
        inv = 1.0 / count
        mean = sum_ref[...] * inv                      # (1, Cout)
        var = ssq_ref[...] * inv - mean * mean         # biased variance
        scale = lax.rsqrt(var + _EPS) * g_ref[...]
        shift = be_ref[...] - mean * scale
        z = y * scale + shift                          # (N*tL, Cout) f32
        z = jnp.where(z > 0, z, jnp.exp(jnp.minimum(z, 0.0)) - 1.0)   # ELU(alpha=1)
        cout = z.shape[-1]
        z3 = z.reshape(N, tL, cout)
        if sample_mode == 'down':                      # MaxPool1d(kernel=3, stride=3)
            z_scr[...] = z3
            tlo = tL // 3
            a0 = z_scr[:, pl.ds(0, tlo, stride=3), :]
            a1 = z_scr[:, pl.ds(1, tlo, stride=3), :]
            a2 = z_scr[:, pl.ds(2, tlo, stride=3), :]
            o_ref[...] = jnp.maximum(jnp.maximum(a0, a1), a2)
        else:                                          # Upsample(scale_factor=3), nearest
            # (N, tL, 3*Cout); wrapper reshapes to (N, 3*L, Cout) for free.
            o_ref[...] = jnp.concatenate([z3, z3, z3], axis=-1)


# --------------------------------------------------------------------- kernels

def _depthwise_kernel(N, tL, L, sample_mode,
                      xc_ref, xl_ref, xr_ref, wf_ref, b_ref, g_ref, be_ref,
                      o_ref, sum_ref, ssq_ref, z_scr):
    # Conv1d(ins, outs, kernel_size=3, padding=1) with the 3 taps fused into one matmul.
    p = pl.program_id(0)
    t = pl.program_id(1)
    num_t = pl.num_programs(1)

    x_c = xc_ref[...]                                   # (N, tL, Cin) bf16
    xl = xl_ref[...][:, 15:16, :]                       # global row t*tL - 1
    xr = xr_ref[...][:, 0:1, :]                         # global row (t+1)*tL
    x_prev, x_next = _shifted_pm1(x_c, xl, xr, t, num_t)

    cin = x_c.shape[-1]
    xa = jnp.concatenate([x_prev, x_c, x_next], axis=-1)      # (N, tL, 3*Cin)
    y = jnp.dot(xa.reshape(N * tL, 3 * cin), wf_ref[...],
                preferred_element_type=jnp.float32) + b_ref[...]   # (N*tL, Cout) f32

    _accumulate_stats(p, t, y, sum_ref, ssq_ref)
    _normalize_resample_store(p, sample_mode, N, tL, N * L, y,
                              g_ref, be_ref, o_ref, sum_ref, ssq_ref, z_scr)


def _dws_kernel(N, tL, L, sample_mode,
                xc_ref, xl_ref, xr_ref, w1_ref, b1_ref, wdw_ref, bdw_ref,
                w2_ref, b2_ref, g_ref, be_ref,
                o_ref, sum_ref, ssq_ref, z_scr):
    # DwsConv: 1x1 conv -> depthwise k=3 conv -> 1x1 conv.
    p = pl.program_id(0)
    t = pl.program_id(1)
    num_t = pl.num_programs(1)

    cin = xc_ref.shape[-1]
    hid = w1_ref.shape[-1]
    w1 = w1_ref[...]                                     # (Cin, H) bf16
    b1 = b1_ref[...]                                     # (1, H)   f32

    x_c = xc_ref[...]                                    # (N, tL, Cin) bf16
    h = jnp.dot(x_c.reshape(N * tL, cin), w1,
                preferred_element_type=jnp.float32) + b1          # (N*tL, H) f32
    h3 = h.reshape(N, tL, hid)

    # Halo rows of h for the depthwise conv (zero at the global sequence edges,
    # since the depthwise conv zero-pads its own input).
    lmask = (t > 0).astype(jnp.float32)
    rmask = (t < num_t - 1).astype(jnp.float32)
    hl = jnp.dot(xl_ref[...].reshape(N * 16, cin), w1,
                 preferred_element_type=jnp.float32) + b1
    hr = jnp.dot(xr_ref[...].reshape(N * 16, cin), w1,
                 preferred_element_type=jnp.float32) + b1
    h_left = hl.reshape(N, 16, hid)[:, 15:16, :] * lmask
    h_right = hr.reshape(N, 16, hid)[:, 0:1, :] * rmask

    h_prev = jnp.concatenate([h_left, h3[:, :-1, :]], axis=1)
    h_next = jnp.concatenate([h3[:, 1:, :], h_right], axis=1)

    # Depthwise k=3: pure VPU multiply-adds (no MXU needed).
    wdw = wdw_ref[...].astype(jnp.float32)               # (3, H)
    hd = (h_prev * wdw[0:1, :] + h3 * wdw[1:2, :] + h_next * wdw[2:3, :]
          + bdw_ref[...])                                # (N, tL, H) f32

    y = jnp.dot(hd.astype(jnp.bfloat16).reshape(N * tL, hid), w2_ref[...],
                preferred_element_type=jnp.float32) + b2_ref[...]   # (N*tL, Cout)

    _accumulate_stats(p, t, y, sum_ref, ssq_ref)
    _normalize_resample_store(p, sample_mode, N, tL, N * L, y,
                              g_ref, be_ref, o_ref, sum_ref, ssq_ref, z_scr)


# --------------------------------------------------------------------- wrapper

def _pick_tile(L, cap=768):
    best = None
    for cand in range(48, min(L, cap) + 1, 48):
        if L % cand == 0:
            best = cand
    if best is None:
        raise ValueError("sequence length must be a multiple of 48")
    return best


def conv_block(x, params, *, conv_mode, sample_mode, tile_len=None):
    """x: (N, L, Cin) float32, channels-last."""
    N, L, Cin = x.shape
    tL = _pick_tile(L) if tile_len is None else tile_len
    assert tL % 48 == 0 and L % tL == 0, (L, tL)
    T = L // tL

    xb = x.astype(jnp.bfloat16)           # bf16 MXU inputs, f32 accumulation
    lblk, nlblk = tL // 16, L // 16

    x_spec = pl.BlockSpec((N, tL, Cin), lambda p, t: (0, t, 0))
    left_spec = pl.BlockSpec(
        (N, 16, Cin), lambda p, t: (0, jnp.maximum(t * lblk - 1, 0), 0))
    right_spec = pl.BlockSpec(
        (N, 16, Cin), lambda p, t: (0, jnp.minimum((t + 1) * lblk, nlblk - 1), 0))

    def const_spec(a):
        return pl.BlockSpec(a.shape, lambda p, t, _nd=a.ndim: (0,) * _nd)

    if conv_mode == 'depth_wise':
        Cout = params['w'].shape[-1]
        wf = params['w'].reshape(3 * Cin, Cout).astype(jnp.bfloat16)  # fused taps
        weights = (wf, params['b'], params['gamma'], params['beta'])
        kernel = functools.partial(_depthwise_kernel, N, tL, L, sample_mode)
    elif conv_mode == 'depth_wise_separable':
        Cout = params['w2'].shape[-1]
        weights = (params['w1'].astype(jnp.bfloat16), params['b1'],
                   params['wdw'].reshape(3, -1).astype(jnp.bfloat16), params['bdw'],
                   params['w2'].astype(jnp.bfloat16), params['b2'],
                   params['gamma'], params['beta'])
        kernel = functools.partial(_dws_kernel, N, tL, L, sample_mode)
    else:
        raise ValueError(conv_mode)

    if sample_mode == 'down':
        out_shape = jax.ShapeDtypeStruct((N, L // 3, Cout), jnp.float32)
        out_spec = pl.BlockSpec((N, tL // 3, Cout), lambda p, t: (0, t * p, 0))
    elif sample_mode == 'up':
        out_shape = jax.ShapeDtypeStruct((N, L, 3 * Cout), jnp.float32)
        out_spec = pl.BlockSpec((N, tL, 3 * Cout), lambda p, t: (0, t * p, 0))
    else:
        raise ValueError(sample_mode)

    inputs = (xb, xb, xb) + weights
    in_specs = [x_spec, left_spec, right_spec] + [const_spec(w) for w in weights]

    out = pl.pallas_call(
        kernel,
        out_shape=out_shape,
        grid=(2, T),                       # (phase, length-tile); tiles pipelined
        in_specs=in_specs,
        out_specs=out_spec,
        scratch_shapes=[pltpu.VMEM((1, Cout), jnp.float32),    # sum(y)
                        pltpu.VMEM((1, Cout), jnp.float32),    # sum(y^2)
                        pltpu.VMEM((N, tL, Cout), jnp.float32)],
        compiler_params=pltpu.CompilerParams(
            dimension_semantics=("arbitrary", "arbitrary")),
    )(*inputs)

    if sample_mode == 'up':
        # (N, L, 3*Cout) row-major == (N, 3*L, Cout) nearest-upsample; free reshape.
        out = out.reshape(N, 3 * L, Cout)
    return out


# ------------------------------------------------------------ plain-JAX reference

_HI = lax.Precision.HIGHEST


def _ref_block(x, params, *, conv_mode, sample_mode):
    dn = ('NWC', 'WIO', 'NWC')
    if conv_mode == 'depth_wise':
        y = lax.conv_general_dilated(x, params['w'], (1,), [(1, 1)],
                                     dimension_numbers=dn, precision=_HI) + params['b']
    else:
        hidden = params['w1'].shape[-1]
        h = lax.conv_general_dilated(x, params['w1'][None], (1,), [(0, 0)],
                                     dimension_numbers=dn, precision=_HI) + params['b1']
        h = lax.conv_general_dilated(h, params['wdw'], (1,), [(1, 1)],
                                     dimension_numbers=dn, feature_group_count=hidden,
                                     precision=_HI) + params['bdw']
        y = lax.conv_general_dilated(h, params['w2'][None], (1,), [(0, 0)],
                                     dimension_numbers=dn, precision=_HI) + params['b2']
    mu = y.mean(axis=(0, 1), keepdims=True)
    var = ((y - mu) ** 2).mean(axis=(0, 1), keepdims=True)
    z = (y - mu) / jnp.sqrt(var + _EPS) * params['gamma'] + params['beta']
    z = jnp.where(z > 0, z, jnp.exp(jnp.minimum(z, 0.0)) - 1.0)
    if sample_mode == 'down':
        N, L, C = z.shape
        z = z[:, :(L // 3) * 3].reshape(N, L // 3, 3, C).max(axis=2)
    else:
        z = jnp.repeat(z, 3, axis=1)
    return z


# ------------------------------------------------------------------------- main

def init_params(key, ins, outs):
    hidden = 8 * outs
    ks = jax.random.split(key, 10)
    s = 0.2
    return {
        # regular Conv1d(ins, outs, k=3, pad=1): stored as (k, Cin, Cout)  (WIO)
        'w': s * jax.random.normal(ks[0], (3, ins, outs), jnp.float32),
        'b': s * jax.random.normal(ks[1], (1, outs), jnp.float32),
        # DwsConv: 1x1 -> depthwise k=3 -> 1x1
        'w1': s * jax.random.normal(ks[2], (ins, hidden), jnp.float32),
        'b1': s * jax.random.normal(ks[3], (1, hidden), jnp.float32),
        'wdw': s * jax.random.normal(ks[4], (3, 1, hidden), jnp.float32),
        'bdw': s * jax.random.normal(ks[5], (1, hidden), jnp.float32),
        'w2': s * jax.random.normal(ks[6], (hidden, outs), jnp.float32),
        'b2': s * jax.random.normal(ks[7], (1, outs), jnp.float32),
        # BatchNorm1d affine params
        'gamma': 1.0 + 0.1 * jax.random.normal(ks[8], (1, outs), jnp.float32),
        'beta': 0.1 * jax.random.normal(ks[9], (1, outs), jnp.float32),
    }


if __name__ == "__main__":
    key = jax.random.PRNGKey(0)
    kx, kp = jax.random.split(key)
    N, ins, outs, L = 2, 4, 8, 96          # L multiple of 48 (tiling + MaxPool1d(3,3))
    x = jax.random.normal(kx, (N, L, ins), jnp.float32)   # layout: (N, L, C)
    params = init_params(kp, ins, outs)

    # tolerance accounts for bf16 MXU inputs (f32 accumulation) vs. f32 reference
    ATOL = RTOL = 3e-2

    for conv_mode in ('depth_wise', 'depth_wise_separable'):
        for sample_mode in ('down', 'up'):
            out = conv_block(x, params, conv_mode=conv_mode,
                             sample_mode=sample_mode, tile_len=48)  # 2 length tiles
            out = jax.block_until_ready(out)
            ref = _ref_block(x, params, conv_mode=conv_mode, sample_mode=sample_mode)
            assert out.shape == ref.shape, (conv_mode, sample_mode, out.shape, ref.shape)
            err = float(jnp.max(jnp.abs(out - ref)))
            assert jnp.allclose(out, ref, atol=ATOL, rtol=RTOL), (
                conv_mode, sample_mode, err)

    # also exercise the single-tile (default tile size) path
    out = conv_block(x, params, conv_mode='depth_wise', sample_mode='down')
    out = jax.block_until_ready(out)
    ref = _ref_block(x, params, conv_mode='depth_wise', sample_mode='down')
    assert jnp.allclose(out, ref, atol=ATOL, rtol=RTOL)

    print("KERNEL_OK")
</pallas_src>

<mosaic_0001>
module attributes {stable_mosaic.version = 11 : i64} {
  func.func @_depthwise_kernel(%arg0: i32, %arg1: i32, %arg2: memref<2x48x4xbf16, #tpu.memory_space<vmem>>, %arg3: memref<2x16x4xbf16, #tpu.memory_space<vmem>>, %arg4: memref<2x16x4xbf16, #tpu.memory_space<vmem>>, %arg5: memref<12x8xbf16, #tpu.memory_space<vmem>>, %arg6: memref<1x8xf32, #tpu.memory_space<vmem>>, %arg7: memref<1x8xf32, #tpu.memory_space<vmem>>, %arg8: memref<1x8xf32, #tpu.memory_space<vmem>>, %arg9: memref<2x16x8xf32, #tpu.memory_space<vmem>>, %arg10: memref<1x8xf32, #tpu.memory_space<vmem>>, %arg11: memref<1x8xf32, #tpu.memory_space<vmem>>, %arg12: memref<2x48x8xf32, #tpu.memory_space<vmem>>) attributes {dimension_semantics = [#tpu.dimension_semantics<arbitrary>, #tpu.dimension_semantics<arbitrary>], iteration_bounds = array<i64: 2, 2>, scalar_prefetch = 0 : i64, scratch_operands = 3 : i64, tpu.core_type = #tpu.core_type<tc>, window_params = [{transform_indices = @transform_0, window_bounds = array<i64: 2, 48, 4>}, {transform_indices = @transform_1, window_bounds = array<i64: 2, 16, 4>}, {transform_indices = @transform_2, window_bounds = array<i64: 2, 16, 4>}, {pipeline_mode = #tpu.pipeline_mode<synchronous>, transform_indices = @transform_3, window_bounds = array<i64: 12, 8>}, {pipeline_mode = #tpu.pipeline_mode<synchronous>, transform_indices = @transform_4, window_bounds = array<i64: 1, 8>}, {pipeline_mode = #tpu.pipeline_mode<synchronous>, transform_indices = @transform_5, window_bounds = array<i64: 1, 8>}, {pipeline_mode = #tpu.pipeline_mode<synchronous>, transform_indices = @transform_6, window_bounds = array<i64: 1, 8>}, {transform_indices = @transform_7, window_bounds = array<i64: 2, 16, 8>}]} {
    %c0 = arith.constant 0 : index
    %c0_0 = arith.constant 0 : index
    %c0_1 = arith.constant 0 : index
    %0 = vector.load %arg2[%c0, %c0_0, %c0_1] : memref<2x48x4xbf16, #tpu.memory_space<vmem>>, vector<2x48x4xbf16>
    %c0_2 = arith.constant 0 : index
    %c0_3 = arith.constant 0 : index
    %c0_4 = arith.constant 0 : index
    %1 = vector.load %arg3[%c0_2, %c0_3, %c0_4] : memref<2x16x4xbf16, #tpu.memory_space<vmem>>, vector<2x16x4xbf16>
    %2 = vector.extract_strided_slice %1 {offsets = [0, 15, 0], sizes = [2, 1, 4], strides = [1, 1, 1]} : vector<2x16x4xbf16> to vector<2x1x4xbf16>
    %c0_5 = arith.constant 0 : index
    %c0_6 = arith.constant 0 : index
    %c0_7 = arith.constant 0 : index
    %3 = vector.load %arg4[%c0_5, %c0_6, %c0_7] : memref<2x16x4xbf16, #tpu.memory_space<vmem>>, vector<2x16x4xbf16>
    %4 = vector.extract_strided_slice %3 {offsets = [0, 0, 0], sizes = [2, 1, 4], strides = [1, 1, 1]} : vector<2x16x4xbf16> to vector<2x1x4xbf16>
    %c0_i32 = arith.constant 0 : i32
    %5 = arith.cmpi sgt, %arg1, %c0_i32 : i32
    %6 = arith.extui %5 : i1 to i32
    %7 = arith.sitofp %6 : i32 to f32
    %8 = arith.truncf %7 : f32 to bf16
    %9 = vector.broadcast %8 : bf16 to vector<2x1x4xbf16>
    %10 = arith.mulf %2, %9 : vector<2x1x4xbf16>
    %c1_i32 = arith.constant 1 : i32
    %11 = arith.cmpi slt, %arg1, %c1_i32 : i32
    %12 = arith.extui %11 : i1 to i32
    %13 = arith.sitofp %12 : i32 to f32
    %14 = arith.truncf %13 : f32 to bf16
    %15 = vector.broadcast %14 : bf16 to vector<2x1x4xbf16>
    %16 = arith.mulf %4, %15 : vector<2x1x4xbf16>
    %17 = vector.extract_strided_slice %0 {offsets = [0, 0, 0], sizes = [2, 47, 4], strides = [1, 1, 1]} : vector<2x48x4xbf16> to vector<2x47x4xbf16>
    %18 = tpu.concatenate %10, %17 in 1 : vector<2x1x4xbf16>, vector<2x47x4xbf16> -> vector<2x48x4xbf16>
    %19 = vector.extract_strided_slice %0 {offsets = [0, 1, 0], sizes = [2, 47, 4], strides = [1, 1, 1]} : vector<2x48x4xbf16> to vector<2x47x4xbf16>
    %20 = tpu.concatenate %19, %16 in 1 : vector<2x47x4xbf16>, vector<2x1x4xbf16> -> vector<2x48x4xbf16>
    %21 = tpu.concatenate %18, %0, %20 in 2 : vector<2x48x4xbf16>, vector<2x48x4xbf16>, vector<2x48x4xbf16> -> vector<2x48x12xbf16>
    %22 = vector.shape_cast %21 : vector<2x48x12xbf16> to vector<96x12xbf16>
    %c0_8 = arith.constant 0 : index
    %c0_9 = arith.constant 0 : index
    %23 = vector.load %arg5[%c0_8, %c0_9] : memref<12x8xbf16, #tpu.memory_space<vmem>>, vector<12x8xbf16>
    %cst = arith.constant dense<0.000000e+00> : vector<96x8xf32>
    %24 = tpu.matmul %22, %23, %cst {dimension_numbers = #tpu.dot_dimension_numbers<[1], [0], [0], [1], [0, 0, 1, 1], [], []>} : vector<96x12xbf16>, vector<12x8xbf16>, vector<96x8xf32> -> vector<96x8xf32>
    %c0_10 = arith.constant 0 : index
    %c0_11 = arith.constant 0 : index
    %25 = vector.load %arg6[%c0_10, %c0_11] : memref<1x8xf32, #tpu.memory_space<vmem>>, vector<1x8xf32>
    %26 = vector.broadcast %25 : vector<1x8xf32> to vector<96x8xf32>
    %27 = arith.addf %24, %26 : vector<96x8xf32>
    %c0_i32_12 = arith.constant 0 : i32
    %28 = arith.cmpi eq, %arg0, %c0_i32_12 : i32
    %c0_i32_13 = arith.constant 0 : i32
    %29 = arith.cmpi eq, %arg1, %c0_i32_13 : i32
    %30 = arith.andi %28, %29 : i1
    %31 = arith.extui %30 : i1 to i32
    %c0_i32_14 = arith.constant 0 : i32
    %32 = arith.cmpi ne, %31, %c0_i32_14 : i32
    scf.if %32 {
      %cst_19 = arith.constant 0.000000e+00 : f32
      %39 = vector.broadcast %cst_19 : f32 to vector<1x8xf32>
      %c0_20 = arith.constant 0 : index
      %c0_21 = arith.constant 0 : index
      %40 = vector.load %arg10[%c0_20, %c0_21] : memref<1x8xf32, #tpu.memory_space<vmem>>, vector<1x8xf32>
      tpu.vector_store %arg10[%c0_20, %c0_21], %39 {strides = array<i32>} : memref<1x8xf32, #tpu.memory_space<vmem>>, vector<1x8xf32>,
      %cst_22 = arith.constant 0.000000e+00 : f32
      %41 = vector.broadcast %cst_22 : f32 to vector<1x8xf32>
      %c0_23 = arith.constant 0 : index
      %c0_24 = arith.constant 0 : index
      %42 = vector.load %arg11[%c0_23, %c0_24] : memref<1x8xf32, #tpu.memory_space<vmem>>, vector<1x8xf32>
      tpu.vector_store %arg11[%c0_23, %c0_24], %41 {strides = array<i32>} : memref<1x8xf32, #tpu.memory_space<vmem>>, vector<1x8xf32>,
    } else {
    }
    %c0_i32_15 = arith.constant 0 : i32
    %33 = arith.cmpi eq, %arg0, %c0_i32_15 : i32
    %34 = arith.extui %33 : i1 to i32
    %c0_i32_16 = arith.constant 0 : i32
    %35 = arith.cmpi ne, %34, %c0_i32_16 : i32
    scf.if %35 {
      %c0_19 = arith.constant 0 : index
      %c0_20 = arith.constant 0 : index
      %39 = vector.load %arg10[%c0_19, %c0_20] : memref<1x8xf32, #tpu.memory_space<vmem>>, vector<1x8xf32>
      %cst_21 = arith.constant dense<0.000000e+00> : vector<8xf32>
      %40 = vector.multi_reduction <add>, %27, %cst_21 [0] : vector<96x8xf32> to vector<8xf32>
      %41 = vector.shape_cast %40 : vector<8xf32> to vector<1x8xf32>
      %42 = arith.addf %39, %41 : vector<1x8xf32>
      %c0_22 = arith.constant 0 : index
      %c0_23 = arith.constant 0 : index
      %43 = vector.load %arg10[%c0_22, %c0_23] : memref<1x8xf32, #tpu.memory_space<vmem>>, vector<1x8xf32>
      tpu.vector_store %arg10[%c0_22, %c0_23], %42 {strides = array<i32>} : memref<1x8xf32, #tpu.memory_space<vmem>>, vector<1x8xf32>,
      %c0_24 = arith.constant 0 : index
      %c0_25 = arith.constant 0 : index
      %44 = vector.load %arg11[%c0_24, %c0_25] : memref<1x8xf32, #tpu.memory_space<vmem>>, vector<1x8xf32>
      %45 = arith.mulf %27, %27 : vector<96x8xf32>
      %cst_26 = arith.constant dense<0.000000e+00> : vector<8xf32>
      %46 = vector.multi_reduction <add>, %45, %cst_26 [0] : vector<96x8xf32> to vector<8xf32>
      %47 = vector.shape_cast %46 : vector<8xf32> to vector<1x8xf32>
      %48 = arith.addf %44, %47 : vector<1x8xf32>
      %c0_27 = arith.constant 0 : index
      %c0_28 = arith.constant 0 : index
      %49 = vector.load %arg11[%c0_27, %c0_28] : memref<1x8xf32, #tpu.memory_space<vmem>>, vector<1x8xf32>
      tpu.vector_store %arg11[%c0_27, %c0_28], %48 {strides = array<i32>} : memref<1x8xf32, #tpu.memory_space<vmem>>, vector<1x8xf32>,
    } else {
    }
    %c1_i32_17 = arith.constant 1 : i32
    %36 = arith.cmpi eq, %arg0, %c1_i32_17 : i32
    %37 = arith.extui %36 : i1 to i32
    %c0_i32_18 = arith.constant 0 : i32
    %38 = arith.cmpi ne, %37, %c0_i32_18 : i32
    scf.if %38 {
      %c0_19 = arith.constant 0 : index
      %c0_20 = arith.constant 0 : index
      %39 = vector.load %arg10[%c0_19, %c0_20] : memref<1x8xf32, #tpu.memory_space<vmem>>, vector<1x8xf32>
      %cst_21 = arith.constant 0.00520833349 : f32
      %40 = vector.broadcast %cst_21 : f32 to vector<1x8xf32>
      %41 = arith.mulf %39, %40 : vector<1x8xf32>
      %c0_22 = arith.constant 0 : index
      %c0_23 = arith.constant 0 : index
      %42 = vector.load %arg11[%c0_22, %c0_23] : memref<1x8xf32, #tpu.memory_space<vmem>>, vector<1x8xf32>
      %cst_24 = arith.constant 0.00520833349 : f32
      %43 = vector.broadcast %cst_24 : f32 to vector<1x8xf32>
      %44 = arith.mulf %42, %43 : vector<1x8xf32>
      %45 = arith.mulf %41, %41 : vector<1x8xf32>
      %46 = arith.subf %44, %45 : vector<1x8xf32>
      %cst_25 = arith.constant 9.99999974E-6 : f32
      %47 = vector.broadcast %cst_25 : f32 to vector<1x8xf32>
      %48 = arith.addf %46, %47 : vector<1x8xf32>
      %49 = math.rsqrt %48 : vector<1x8xf32>
      %c0_26 = arith.constant 0 : index
      %c0_27 = arith.constant 0 : index
      %50 = vector.load %arg7[%c0_26, %c0_27] : memref<1x8xf32, #tpu.memory_space<vmem>>, vector<1x8xf32>
      %51 = arith.mulf %49, %50 : vector<1x8xf32>
      %c0_28 = arith.constant 0 : index
      %c0_29 = arith.constant 0 : index
      %52 = vector.load %arg8[%c0_28, %c0_29] : memref<1x8xf32, #tpu.memory_space<vmem>>, vector<1x8xf32>
      %53 = arith.mulf %41, %51 : vector<1x8xf32>
      %54 = arith.subf %52, %53 : vector<1x8xf32>
      %55 = vector.broadcast %51 : vector<1x8xf32> to vector<96x8xf32>
      %56 = arith.mulf %27, %55 : vector<96x8xf32>
      %57 = vector.broadcast %54 : vector<1x8xf32> to vector<96x8xf32>
      %58 = arith.addf %56, %57 : vector<96x8xf32>
      %cst_30 = arith.constant 0.000000e+00 : f32
      %59 = vector.broadcast %cst_30 : f32 to vector<96x8xf32>
      %60 = arith.cmpf ogt, %58, %59 : vector<96x8xf32>
      %cst_31 = arith.constant 0.000000e+00 : f32
      %61 = vector.broadcast %cst_31 : f32 to vector<96x8xf32>
      %62 = arith.minimumf %58, %61 : vector<96x8xf32>
      %63 = math.exp %62 : vector<96x8xf32>
      %cst_32 = arith.constant 1.000000e+00 : f32
      %64 = vector.broadcast %cst_32 : f32 to vector<96x8xf32>
      %65 = arith.subf %63, %64 : vector<96x8xf32>
      %66 = arith.select %60, %58, %65 : vector<96x8xi1>, vector<96x8xf32>
      %67 = vector.shape_cast %66 : vector<96x8xf32> to vector<2x48x8xf32>
      %c0_33 = arith.constant 0 : index
      %c0_34 = arith.constant 0 : index
      %c0_35 = arith.constant 0 : index
      %68 = vector.load %arg12[%c0_33, %c0_34, %c0_35] : memref<2x48x8xf32, #tpu.memory_space<vmem>>, vector<2x48x8xf32>
      tpu.vector_store %arg12[%c0_33, %c0_34, %c0_35], %67 {strides = array<i32>} : memref<2x48x8xf32, #tpu.memory_space<vmem>>, vector<2x48x8xf32>,
      %c0_36 = arith.constant 0 : index
      %c0_37 = arith.constant 0 : index
      %c0_38 = arith.constant 0 : index
      %69 = tpu.strided_load %arg12[%c0_36, %c0_37, %c0_38] {strides = array<i32: 1, 3, 1>} : memref<2x48x8xf32, #tpu.memory_space<vmem>>, vector<2x16x8xf32>
      %c0_39 = arith.constant 0 : index
      %c1 = arith.constant 1 : index
      %c0_40 = arith.constant 0 : index
      %70 = tpu.strided_load %arg12[%c0_39, %c1, %c0_40] {strides = array<i32: 1, 3, 1>} : memref<2x48x8xf32, #tpu.memory_space<vmem>>, vector<2x16x8xf32>
      %c0_41 = arith.constant 0 : index
      %c2 = arith.constant 2 : index
      %c0_42 = arith.constant 0 : index
      %71 = tpu.strided_load %arg12[%c0_41, %c2, %c0_42] {strides = array<i32: 1, 3, 1>} : memref<2x48x8xf32, #tpu.memory_space<vmem>>, vector<2x16x8xf32>
      %72 = arith.maximumf %69, %70 : vector<2x16x8xf32>
      %73 = arith.maximumf %72, %71 : vector<2x16x8xf32>
      %c0_43 = arith.constant 0 : index
      %c0_44 = arith.constant 0 : index
      %c0_45 = arith.constant 0 : index
      %74 = vector.load %arg9[%c0_43, %c0_44, %c0_45] : memref<2x16x8xf32, #tpu.memory_space<vmem>>, vector<2x16x8xf32>
      tpu.vector_store %arg9[%c0_43, %c0_44, %c0_45], %73 {strides = array<i32>} : memref<2x16x8xf32, #tpu.memory_space<vmem>>, vector<2x16x8xf32>,
    } else {
    }
    return
  }
  func.func @transform_0(%arg0: i32, %arg1: i32) -> (i32, i32, i32) {
    %c0_i32 = arith.constant 0 : i32
    %c0_i32_0 = arith.constant 0 : i32
    %c0_i32_1 = arith.constant 0 : i32
    return %c0_i32, %arg1, %c0_i32_0 : i32, i32, i32
  }
  func.func @transform_1(%arg0: i32, %arg1: i32) -> (i32, i32, i32) {
    %c3_i32 = arith.constant 3 : i32
    %0 = arith.muli %arg1, %c3_i32 : i32
    %c1_i32 = arith.constant 1 : i32
    %1 = arith.subi %0, %c1_i32 : i32
    %c0_i32 = arith.constant 0 : i32
    %2 = arith.maxsi %1, %c0_i32 : i32
    %c0_i32_0 = arith.constant 0 : i32
    %c0_i32_1 = arith.constant 0 : i32
    %c0_i32_2 = arith.constant 0 : i32
    return %c0_i32_0, %2, %c0_i32_1 : i32, i32, i32
  }
  func.func @transform_2(%arg0: i32, %arg1: i32) -> (i32, i32, i32) {
    %c1_i32 = arith.constant 1 : i32
    %0 = arith.addi %arg1, %c1_i32 : i32
    %c3_i32 = arith.constant 3 : i32
    %1 = arith.muli %0, %c3_i32 : i32
    %c5_i32 = arith.constant 5 : i32
    %2 = arith.minsi %1, %c5_i32 : i32
    %c0_i32 = arith.constant 0 : i32
    %c0_i32_0 = arith.constant 0 : i32
    %c0_i32_1 = arith.constant 0 : i32
    return %c0_i32, %2, %c0_i32_0 : i32, i32, i32
  }
  func.func @transform_3(%arg0: i32, %arg1: i32) -> (i32, i32) {
    %c0_i32 = arith.constant 0 : i32
    %c0_i32_0 = arith.constant 0 : i32
    %c0_i32_1 = arith.constant 0 : i32
    return %c0_i32, %c0_i32_0 : i32, i32
  }
  func.func @transform_4(%arg0: i32, %arg1: i32) -> (i32, i32) {
    %c0_i32 = arith.constant 0 : i32
    %c0_i32_0 = arith.constant 0 : i32
    %c0_i32_1 = arith.constant 0 : i32
    return %c0_i32, %c0_i32_0 : i32, i32
  }
  func.func @transform_5(%arg0: i32, %arg1: i32) -> (i32, i32) {
    %c0_i32 = arith.constant 0 : i32
    %c0_i32_0 = arith.constant 0 : i32
    %c0_i32_1 = arith.constant 0 : i32
    return %c0_i32, %c0_i32_0 : i32, i32
  }
  func.func @transform_6(%arg0: i32, %arg1: i32) -> (i32, i32) {
    %c0_i32 = arith.constant 0 : i32
    %c0_i32_0 = arith.constant 0 : i32
    %c0_i32_1 = arith.constant 0 : i32
    return %c0_i32, %c0_i32_0 : i32, i32
  }
  func.func @transform_7(%arg0: i32, %arg1: i32) -> (i32, i32, i32) {
    %0 = arith.muli %arg1, %arg0 : i32
    %c0_i32 = arith.constant 0 : i32
    %c0_i32_0 = arith.constant 0 : i32
    %c0_i32_1 = arith.constant 0 : i32
    return %c0_i32, %0, %c0_i32_0 : i32, i32, i32
  }
}

</mosaic_0001>

<bundles_post_ra>
// kernel: tpu_custom_call.1
= control target key start
LH: loop header
LB: loop body
LE: loop exit
PB: predicated region body
PF: predicated region fallthrough
CT: control target
= control target key end

     0   :  { %s2255_s0 = inlined_call_operand.vmem [shape: bf16[2,96,4], index: 0, kind: input, shape index: {}]   ;;  %s2256_s1 = inlined_call_operand.vmem [shape: bf16[2,96,4], index: 1, kind: input, shape index: {}]   ;;  %s2257_s2 = inlined_call_operand.vmem [shape: bf16[2,96,4], index: 2, kind: input, shape index: {}]   ;;  %s2258_s3 = inlined_call_operand.vmem [shape: bf16[12,8], index: 3, kind: input, shape index: {}]   ;;  %s2259_s4 = inlined_call_operand.vmem [shape: f32[1,8], index: 4, kind: input, shape index: {}]   ;;  %s2260_s5 = inlined_call_operand.vmem [shape: f32[1,8], index: 5, kind: input, shape index: {}]   ;;  %s2261_s6 = inlined_call_operand.vmem [shape: f32[1,8], index: 6, kind: input, shape index: {}]   ;;  %s2262_s7 = inlined_call_operand.vmem [shape: f32[2,32,8], index: 7, kind: output, shape index: {}]  }
   0x1   :  { %2266 = sst [smem:[#allocation14_spill]] %s2255_s0 }
   0x2   :  { %2267 = sst [smem:[#allocation15_spill]] %s2258_s3 }
   0x3   :  { %2268 = sst [smem:[#allocation16_spill]] %s2259_s4 }
   0x4   :  { %2269 = sst [smem:[#allocation17_spill]] %s2260_s5 }
   0x5   :  { %2270 = sst [smem:[#allocation18_spill]] %s2261_s6 }
   0x6   :  { %2271 = sst [smem:[#allocation19_spill]] %s2262_s7 }
   0x7   :  { %s1714_s24 = smov 0   ;;  %s1716_s25 = smov 0  }
   0x8   :  { %s1718_s26 = smov 0   ;;  %s1720_s27 = smov 0  }
   0x9   :  { %s1722_s28 = smov 0   ;;  %s1724_s29 = smov 0  }
   0xa   :  { %s1726_s30 = smov 0   ;;  %s1728_s8 = smov 0  }
   0xb   :  { %s1730_s9 = smov 0   ;;  %s1732_s10 = smov 0  }
   0xc   :  { %s1734_s11 = smov 0   ;;  %s1736_s12 = smov 0  }
   0xd   :  { %s1738_s13 = smov 0  }
   0xe LB: > { %2272 = sst [smem:[#allocation9_spill]] %s1637_s28  ;;  %s1781_s15 = sadd.s32 1, %s1661_s11  ;;  %s1669_s13 = sphi %s1738_s13, %s17_s13   ;;  %s1665_s12 = sphi %s1736_s12, %s2312_s12   ;;  %s1661_s11 = sphi %s1734_s11, %s2311_s11   ;;  %s1657_s10 = sphi %s1732_s10, %s2300_s10   ;;  %s1653_s9 = sphi %s1730_s9, %s2310_s9   ;;  %s1649_s8 = sphi %s1728_s8, %s2309_s8   ;;  %s1645_s30 = sphi %s1726_s30, %s2308_s30   ;;  %s1641_s29 = sphi %s1724_s29, %s2307_s29   ;;  %s1637_s28 = sphi %s1722_s28, %s2306_s28   ;;  %s1633_s27 = sphi %s1720_s27, %s2305_s27   ;;  %s1629_s26 = sphi %s1718_s26, %s2304_s26   ;;  %s1625_s25 = sphi %s1716_s25, %s2303_s25   ;;  %s1621_s24 = sphi %s1714_s24, %s2302_s24  }
   0xf   : > { %2273 = sst [smem:[#allocation10_spill]] %s1653_s9  ;;  %p27_p0 = scmp.ge.s32.totalorder %s1781_s15, 2 }
  0x10   : > { %2274 = sst [smem:[#allocation11_spill]] %s1657_s10  ;;  %s29_s16 = sadd.s32 1, %s1665_s12 }
  0x11   : > { %2275 = sst [smem:[#allocation12_spill]] %s1665_s12  ;;  %s36_s17 = sadd.s32 1, %s1649_s8 }
  0x12   : > { %p43_p1 = scmp.ne.s32.totalorder %s1649_s8, %s1645_s30  ;;  %s2314_s16 = smov (!%p27_p0, %s29_s16), %s1665_s12 }
  0x13   : > { %s1789_s18 = scalar_select %p27_p0, 0, %s1781_s15  }
  0x14   : > { %p44_p2 = scmp.eq.s32.totalorder %s1669_s13, 0  ;;  %p31_p3 = scmp.ge.s32.totalorder %s2314_s16, 2 }
  0x15   : > { %s33_s19 = ssub.s32 %s1661_s11, %s1789_s18  ;;  %s59_s21 = smul.u32 3, %s1661_s11 }
  0x16   : > { %p34_p4 = scmp.eq.s32.totalorder %s33_s19, 0  ;;  %p1797_p5 = por %p44_p2, %p43_p1 }
  0x17   : > { %s2316_s16 = smov (%p31_p3, %s2314_s16), 0  ;;  %s1343_s23 = sadd.s32 4294967295, %s59_s21 }
  0x18   : > { %s1805_s22 = scalar_select %p34_p4, %s1649_s8, %s36_s17  }
  0x19   : > { %s63_s14 = smul.u32 3, %s1789_s18  ;;  %p61_p6 = scmp.gt.s32.totalorder %s1343_s23, 0 }
  0x1a   : > { %2277 = sst [smem:[#allocation13_spill]] %s1805_s22  ;;  %s70_s7 = sadd.s32 1, %s1641_s29 }
  0x1b   : > { %s1344_s6 = sadd.s32 4294967295, %s63_s14  ;;  %p77_p7 = scmp.ne.s32.totalorder %s1641_s29, %s1637_s28 }
  0x1c   : > { %s2318_s23 = smov (!%p61_p6, %s1343_s23), 0  ;;  %p65_p8 = scmp.gt.s32.totalorder %s1344_s6, 0 }
  0x1d   : > { %p1815_p9 = por %p77_p7, %p44_p2  ;;  %s94_s19 = smul.u32 3, %s1781_s15 }
  0x1e   : > { %s97_s21 = sadd.s32 1, %s1789_s18  ;;  %s2320_s6 = smov (!%p65_p8, %s1344_s6), 0 }
  0x1f   : > { %p95_p10 = scmp.lt.s32.totalorder %s94_s19, 5  ;;  %s98_s14 = smul.u32 3, %s97_s21 }
  0x20   : > { %s67_s22 = ssub.s32 %s2318_s23, %s2320_s6  ;;  %s104_s5 = sadd.s32 1, %s1633_s27 }
  0x21   : > { %p68_p11 = scmp.eq.s32.totalorder %s67_s22, 0  ;;  %p99_p12 = scmp.lt.s32.totalorder %s98_s14, 5 }
  0x22   : > { %s2322_s19 = smov (!%p95_p10, %s94_s19), 5  ;;  %p111_p13 = scmp.ne.s32.totalorder %s1633_s27, %s1629_s26 }
  0x23   : > { %s1826_s4 = scalar_select %p68_p11, %s1641_s29, %s70_s7  }
  0x24   : > { %s2324_s14 = smov (!%p99_p12, %s98_s14), 5  ;;  %s211_s15 = smul.u32 %s1661_s11, %s1665_s12 }
  0x25   : > { %s101_s10 = ssub.s32 %s2322_s19, %s2324_s14  ;;  %s212_s28 = smul.u32 %s2316_s16, %s1789_s18 }
  0x26   : > { %p102_p0 = scmp.eq.s32.totalorder %s101_s10, 0  ;;  %p1837_p1 = por %p111_p13, %p44_p2 }
  0x27   : > { %s213_s22 = ssub.s32 %s211_s15, %s212_s28  ;;  %s216_s21 = sadd.s32 1, %s1625_s25 }
  0x28   : > { %s1843_s3 = scalar_select %p102_p0, %s1633_s27, %s104_s5  }
  0x29   : > { %p214_p3 = scmp.eq.s32.totalorder %s213_s22, 0  ;;  %p226_p4 = scmp.ne.s32.totalorder %s1625_s25, %s1621_s24 }
  0x2a   : > { %s2280_s9 = sadd.s32 4294967295, %s1669_s13   ;;  %p1346_p8 = scmp.ge.s32.totalorder %s1669_s13, 4 }
  0x2b   : > { %p227_p6 = scmp.eq.s32.totalorder %s2280_s9, 3 }
  0x2c   : > { %s1850_s7 = scalar_select %p214_p3, %s1625_s25, %s216_s21  }
  0x2d   : > { %p1852_p7 = por %p227_p6, %p226_p4  ;;  %261 = sbr.rel (%p1346_p8) target bundleno = 78 (0x4e), region = 32 }
  0x34   : > { %264 = sbr.rel (!%p1797_p5) target bundleno = 64 (0x40), region = 36  ;;  %s266_s5 = sand.u32 (%p1797_p5), 1, %s1649_s8  }
  0x35   : > { %s1396_s28 = smul.u32 (%p1797_p5), 24, %s1661_s11  ;;  %s2282_s0 = sld [smem:[#allocation14_spill]] (%p1797_p5) }
  0x36   : > { %s1425_s10 = smul.u32 (%p1797_p5), 48, %s266_s5 }
  0x38   : > { %s268_s22 = scalar_lea.vmem (%p1797_p5), [#allocation5], %s1425_s10 }
  0x3b   : > { %s271_s9 = scalar_lea.vmem %s2282_s0, %s1396_s28 }
  0x3c   : > { %v287_v0 = vld [vmem:[%s271_s9] sm:$0xff]   ;;  %v291_v1 = vld [vmem:[%s271_s9 + $0x8] sm:$0xff]   ;;  %v295_v2 = vld [vmem:[%s271_s9 + $0x10] sm:$0xff]  }
  0x3d   : > { %288 = vst [vmem:[%s268_s22] sm:$0xff] %v287_v0   ;;  %292 = vst [vmem:[%s268_s22 + $0x8] sm:$0xff] %v291_v1   ;;  %v299_v3 = vld [vmem:[%s271_s9 + $0x30] sm:$0xff]   ;;  %v303_v4 = vld [vmem:[%s271_s9 + $0x38] sm:$0xff]  }
  0x3e   : > { %296 = vst [vmem:[%s268_s22 + $0x10] sm:$0xff] %v295_v2   ;;  %v307_v5 = vld [vmem:[%s271_s9 + $0x40] sm:$0xff]   ;;  %300 = vst [vmem:[%s268_s22 + $0x18] sm:$0xff] %v299_v3  }
  0x3f   : > { %304 = vst [vmem:[%s268_s22 + $0x20] sm:$0xff] %v303_v4   ;;  %308 = vst [vmem:[%s268_s22 + $0x28] sm:$0xff] %v307_v5  }
  0x40 PF: > { %357 = sbr.rel (!%p1815_p9) target bundleno = 71 (0x47), region = 77  ;;  %s359_s20 = sand.u32 (%p1815_p9), 1, %s1641_s29  }
  0x41   : > { %s1397_s21 = sshll.u32 (%p1815_p9), %s2318_s23, 3  ;;  %s1348_s5 = sshll.u32 (%p1815_p9), %s359_s20, 4 }
  0x42   : > { %s368_s14 = scalar_lea.vmem (%p1815_p9), %s2256_s1, %s1397_s21  ;;  %s361_s15 = scalar_lea.vmem (%p1815_p9), [#allocation6], %s1348_s5 }
  0x43   : > { %v384_v6 = vld [vmem:[%s368_s14] sm:$0xff] (%p1815_p9)   ;;  %v388_v7 = vld [vmem:[%s368_s14 + $0x30] sm:$0xff] (%p1815_p9)  }
  0x44   : > { %385 = vst [vmem:[%s361_s15] sm:$0xff] (%p1815_p9), %v384_v6   ;;  %389 = vst [vmem:[%s361_s15 + $0x8] sm:$0xff] (%p1815_p9), %v388_v7  }
  0x47 PF: > { %422 = sbr.rel (!%p1837_p1) target bundleno = 78 (0x4e), region = 118  ;;  %s424_s17 = sand.u32 (%p1837_p1), 1, %s1633_s27  }
  0x48   : > { %s1398_s9 = sshll.u32 (%p1837_p1), %s2322_s19, 3  ;;  %s1352_s22 = sshll.u32 (%p1837_p1), %s424_s17, 4 }
  0x49   : > { %s433_s0 = scalar_lea.vmem (%p1837_p1), %s2257_s2, %s1398_s9  ;;  %s426_s21 = scalar_lea.vmem (%p1837_p1), [#allocation7], %s1352_s22 }
  0x4a   : > { %v449_v8 = vld [vmem:[%s433_s0] sm:$0xff] (%p1837_p1)   ;;  %v453_v9 = vld [vmem:[%s433_s0 + $0x30] sm:$0xff] (%p1837_p1)  }
  0x4b   : > { %450 = vst [vmem:[%s426_s21] sm:$0xff] (%p1837_p1), %v449_v8   ;;  %454 = vst [vmem:[%s426_s21 + $0x8] sm:$0xff] (%p1837_p1), %v453_v9  }
  0x4e PF: > { %p1355_p2 = scmp.ge.s32.totalorder %s1669_s13, 1  ;;  %p486_p5 = scmp.lt.s32.totalorder %s1669_s13, 5 }
  0x50   : > { %p487_p9 = pnand %p1355_p2, %p486_p5 }
  0x51   : > { %s2283_s19 = sld [smem:[#allocation10_spill]] (!%p487_p9)  ;;  %s493_s6 = sand.u32 (!%p487_p9), 1, %s1645_s30   ;;  %vm712_vm0 = vsmask.f32 (!%p487_p9), 7424  ;;  %vm659_vm1 = vsmask.f32 (!%p487_p9), 256 }
  0x52   : > { %490 = sbr.rel (%p487_p9) target bundleno = 596 (0x254), region = 159  ;;  %s1671_s0 = smov (!%p487_p9), 4   ;;  %vm836_vm2 = vcmask (!%p487_p9), 1045504   ;;  %vm747_vm3 = vcmask (!%p487_p9), 1047552   ;;  %vm708_vm5 = vcmask (!%p487_p9), 1040384   ;;  %vm777_vm7 = vcmask (!%p487_p9), 31744  }
  0x53   : > { %s1426_s5 = smul.u32 (!%p487_p9), 48, %s493_s6  ;;  %s507_s30 = sand.u32 (!%p487_p9), 1, %s1629_s26   ;;  %vm748_vm4 = vmand (!%p487_p9), %vm747_vm3, %vm712_vm0  ;;  %vm823_vm8 = vcmask (!%p487_p9), 97280   ;;  %vm796_vm9 = vcmask (!%p487_p9), 64512  }
  0x54   : > { %s1912_s26 = sshll.u32 (!%p487_p9), %s507_s30, 4  ;;  %s1672_s15 = smov (!%p487_p9), 8   ;;  %vm1974_vm6 = vmand (!%p487_p9), %vm708_vm5, %vm659_vm1 }
  0x55   : > { %s1881_s28 = scalar_lea.vmem (!%p487_p9), [#allocation5], %s1426_s5  ;;  %s2284_s20 = sld [smem:[#allocation15_spill]] (!%p487_p9) }
  0x56   : > { %v1884_v10 = vld [vmem:[%s1881_s28 + $0x10] sm:$0xff] (!%p487_p9)   ;;  %v1535_v11 = vld [vmem:[%s1881_s28 + $0x18] sm:$0xff] (!%p487_p9)   ;;  %v1536_v12 = vld [vmem:[%s1881_s28] sm:$0xff] (!%p487_p9)   ;;  %s542_s5 = sand.u32 (!%p487_p9), 1, %s1621_s24  }
  0x57   : > { %755 = vrot.lane.b32.xlu0 (!%p487_p9), %v1884_v10, %s1671_s0  ;;  %p594_p10 = scmp.lt.s32.totalorder (!%p487_p9), %s2283_s19, 1  ;;  %v687_v13 = vshll.u32 (!%p487_p9), %v1535_v11, 16  ;;  %v1892_v14 = vld [vmem:[%s1881_s28 + $0x20] sm:$0xff] (!%p487_p9)   ;;  %v664_v15 = vshll.u32 (!%p487_p9), %v1536_v12, 16  ;;  %v1538_v16 = vld [vmem:[%s1881_s28 + $0x8] sm:$0xff] (!%p487_p9)   ;;  %v684_v17 = vshrl.u32 (!%p487_p9), %v1535_v11, 16 }
  0x58   : > { %759 = vrot.lane.b32.xlu1 (!%p487_p9), %v1892_v14, %s1671_s0  ;;  %v694_v18 = vshll.u32 (!%p487_p9), %v1892_v14, 16  ;;  %v661_v20 = vshrl.u32 (!%p487_p9), %v1536_v12, 16  ;;  %v671_v21 = vshll.u32 (!%p487_p9), %v1538_v16, 16  ;;  %v676_v22 = vshrl.u32 (!%p487_p9), %v1884_v10, 16  ;;  %v1919_v33 = vld [vmem:[%s1881_s28 + $0x28] sm:$0xff] (!%p487_p9)   ;;  %s1939_s30 = sshll.u32 (!%p487_p9), %s542_s5, 5 }
  0x59   : > { %v721_v19 = vrot.slane %v687_v13, 1  ;;  %s595_s10 = scalar_select %p594_p10, 1, 0  ;;  %v686_v25 = vrot.slane %v684_v17, 7  ;;  %v713_v26 = vrot.slane %v664_v15, 1  ;;  %v679_v27 = vshll.u32 %v1884_v10, 16 }
  0x5a   : > { %v1903_v24 = vrot.slane %v694_v18, 1  ;;  %v663_v28 = vrot.slane %v661_v20, 7  ;;  %v678_v29 = vrot.slane %v676_v22, 7  ;;  %v691_v31 = vshrl.u32 %v1892_v14, 16  ;;  %p575_p12 = scmp.gt.s32.totalorder %s2283_s19, 0  ;;  %p922_p1 = scmp.eq.s32.totalorder %s2283_s19, 0 }
  0x5b   : > { %757 = vrot.lane.b32.xlu0 %v1535_v11, %s1671_s0  ;;  %v722_v23 = vor.u32 %v721_v19, %v684_v17  ;;  %s1906_s14 = scvt.s32.f32 %s595_s10  ;;  %v668_v32 = vshrl.u32 %v1538_v16, 16  ;;  %v1921_v35 = vor.u32 %v687_v13, %v686_v25  ;;  %v714_v36 = vor.u32 %v713_v26, %v661_v20  ;;  %v1540_v39 = vld [vmem:[%s2284_s20] sm:$0x3f]   ;;  %s509_s10 = scalar_lea.vmem [#allocation7], %s1912_s26 }
  0x5c   : > { %v681_v34 = vor.u32 %v679_v27, %v678_v29  ;;  %v715_v37 = vrot.slane %v671_v21, 1  ;;  %v693_v38 = vrot.slane %v691_v31, 7  ;;  %v699_v40 = vshrl.u32 %v1919_v33, 16  ;;  %1424 = vmatprep.subr.msk.bf16.mxu1 %vm836_vm2, %v1540_v39  ;;  %1423 = vmatprep.subr.msk.bf16.mxu0 %vm836_vm2, %v1540_v39  ;;  %v573_v54 = vld [vmem:[%s509_s10] sm:$0xf]  ;;  %s2285_s26 = sld [smem:[#allocation9_spill]] }
  0x5d   : > { %v724_v30 = vsel %vm712_vm0, %v722_v23, %v1903_v24  ;;  %s599_s17 = sshrl.u32 %s1906_s14, 16  ;;  %p598_p11 = scmp.ne.f32.partialorder %s1906_s14, %s1906_s14  ;;  %v670_v41 = vrot.slane %v668_v32, 7  ;;  %v1931_v42 = vor.u32 %v664_v15, %v663_v28  ;;  %v838_v50 = vsel %vm836_vm2, %v1540_v39, 0  ;;  %v574_v58 = vld [vmem:[%s509_s10 + $0x8] sm:$0xf] }
  0x5e   : > { %771 = vrot.lane.b32.xlu1 %v724_v30, %s1672_s15  ;;  %s600_s9 = sand.u32 1, %s599_s17  ;;  %v696_v43 = vor.u32 %v694_v18, %v693_v38  ;;  %v701_v44 = vrot.slane %v699_v40, 7  ;;  %v716_v47 = vsel %vm712_vm0, %v714_v36, %v715_v37  ;;  %v717_v48 = vor.u32 %v715_v37, %v668_v32  ;;  %1422 = vmatpush3.bf16.msra.mxu1 %v838_v50  ;;  %s2040_s19 = scalar_lea.vmem [#allocation8], %s1939_s30 }
  0x5f   : > { %751 = vrot.lane.b32.xlu0 %v1536_v12, %s1671_s0  ;;  %s601_s21 = sadd.s32 32767, %s600_s9  ;;  %v1937_v45 = vsel %vm659_vm1, %v670_v41, %v681_v34  ;;  %v673_v46 = vor.u32 %v671_v21, %v670_v41  ;;  %v702_v51 = vshll.u32 %v1919_v33, 16  ;;  %1408 = vmatpush3.bf16.msra.mxu0 %v838_v50  ;;  %v718_v53 = vrot.slane %v679_v27, 1 }
  0x60   : > { %s602_s6 = sadd.s32 %s601_s21, %s1906_s14  ;;  %v1946_v49 = vsel %vm659_vm1, %v686_v25, %v696_v43  ;;  %v725_v4 = vor.u32 %v1903_v24, %v691_v31 }
  0x61   : > { %s603_s28 = sand.u32 4294901760, %s602_s6  ;;  %v1950_v52 = vsel %vm659_vm1, %v663_v28, %v673_v46  ;;  %v704_v55 = vor.u32 %v702_v51, %v701_v44  ;;  %v719_v56 = vsel %vm712_vm0, %v717_v48, %v718_v53  ;;  %v720_v63 = vor.u32 %v718_v53, %v676_v22 }
  0x62   : > { %s2326_s28 = smov (%p598_p11, %s603_s28), 2143289344  ;;  %v726_v5 = vrot.slane %v702_v51, 1 }
  0x63   : > { %753 = vrot.lane.b32.xlu0 %v1538_v16, %s1671_s0  ;;  %s606_s24 = sshrl.u32 %s2326_s28, 16  ;;  %v1956_v59 = vsel %vm659_vm1, %v693_v38, %v704_v55 }
  0x64   : > { %s607_s14 = sshll.u32 %s606_s24, 16  ;;  %v727_v7 = vsel %vm712_vm0, %v725_v4, %v726_v5  ;;  %v728_v8 = vor.u32 %v726_v5, %v699_v40 }
  0x65   : > { %s608_s17 = sor.u32 %s607_s14, %s606_s24 }
  0x66   : > { %v609_v57 = vstv %s608_s17  ;;  %s576_s9 = scalar_select %p575_p12, 1, 0 }
  0x67   : > { %765 = vrot.lane.b32.xlu0 %v716_v47, %s1672_s15  ;;  %v611_v60 = vmul.bf16 %v609_v57, %v573_v54  ;;  %v612_v62 = vmul.bf16 %v609_v57, %v574_v58 }
  0x68   : > { %s577_s22 = scvt.s32.f32 %s576_s9 }
  0x69   : > { %v1367_v61 = vcombine.low %v611_v60, %v611_v60  ;;  %v1368_v2 = vcombine.low %v612_v62, %v612_v62 }
  0x6a   : > { %s580_s23 = sshrl.u32 %s577_s22, 16  ;;  %p579_p13 = scmp.ne.f32.partialorder %s577_s22, %s577_s22 }
  0x6b   : > { %767 = vrot.lane.b32.xlu0 %v719_v56, %s1672_s15  ;;  %v738_v0 = vshll.u32 %v1367_v61, 16  ;;  %v742_v6 = vshll.u32 %v1368_v2, 16  ;;  %s581_s20 = sand.u32 1, %s580_s23  ;;  %s2290_s23 = sld [smem:[#allocation16_spill]] }
  0x6c   : > { %s582_s21 = sadd.s32 32767, %s581_s20 }
  0x6d   : > { %v740_v1 = vrot.slane %v738_v0, 1  ;;  %v744_v9 = vrot.slane %v742_v6, 1  ;;  %s583_s6 = sadd.s32 %s582_s21, %s577_s22 }
  0x6e   : > { %s584_s5 = sand.u32 4294901760, %s583_s6 }
  0x6f   : > { %v749_v3 = vsel %vm748_vm4, %v720_v63, %v740_v1  ;;  %v750_v10 = vsel %vm748_vm4, %v728_v8, %v744_v9  ;;  %s2328_s5 = smov (%p579_p13, %s584_s5), 2143289344 }
  0x70   : > { %769 = vrot.lane.b32.xlu1 %v749_v3, %s1672_s15  ;;  %s587_s28 = sshrl.u32 %s2328_s5, 16 }
  0x71   : > { %s588_s10 = sshll.u32 %s587_s28, 16 }
  0x72   : > { %s589_s14 = sor.u32 %s588_s10, %s587_s28 }
  0x73   : > { %v590_v12 = vstv %s589_s14 }
  0x74   : > { %761 = vrot.lane.b32.xlu1 %v1919_v33, %s1671_s0  ;;  %s500_s0 = sand.u32 1, %s2285_s26  }
  0x75   : > { %s1356_s24 = sshll.u32 %s500_s0, 4 }
  0x76   : > { %s502_s17 = scalar_lea.vmem [#allocation6], %s1356_s24 }
  0x77   : > { %v571_v11 = vld [vmem:[%s502_s17 + $0x4] sm:$0xf]  ;;  %v572_v18 = vld [vmem:[%s502_s17 + $0xc] sm:$0xf] }
  0x78   : > { %773 = vrot.lane.b32.xlu1 %v727_v7, %s1672_s15  ;;  %v592_v13 = vmul.bf16 %v590_v12, %v571_v11  ;;  %v593_v20 = vmul.bf16 %v590_v12, %v572_v18 }
  0x7a   : > { %v1359_v14 = vcombine.low %v592_v13, %v592_v13  ;;  %v1360_v24 = vcombine.low %v593_v20, %v593_v20 }
  0x7c   : > { %775 = vrot.lane.b32.xlu1 %v750_v10, %s1672_s15  ;;  %v620_v16 = vshrl.u32 %v1359_v14, 16  ;;  %v624_v27 = vshrl.u32 %v1360_v24, 16  ;;  %s2288_s15 = sld [smem:[#allocation11_spill]] }
  0x7e   : > { %v622_v19 = vrot.slane %v620_v16, 3  ;;  %v626_v32 = vrot.slane %v624_v27, 3 }
  0x80   : > { %v710_v23 = vsel %vm1974_vm6, %v622_v19, %v1931_v42  ;;  %v711_v37 = vsel %vm1974_vm6, %v626_v32, %v1921_v35 }
  0x82   : > { %p921_p0 = scmp.eq.s32.totalorder %s2288_s15, 0 }
  0x84   : > { %p2008_p3 = pnand %p922_p1, %p921_p0 }
  0x85   : > { %vm927_vm10 = vcmask (!%p2008_p3), 57344   ;;  %v1673_v10 = vmov (!%p2008_p3), 0.0  }
  0x86   : > { %928 = vst.msk [vmem:[#allocation2] sm:$0x1] (!%p2008_p3), %vm927_vm10, %v1673_v10  ;;  %929 = vst.msk [vmem:[#allocation3] sm:$0x1] (!%p2008_p3), %vm927_vm10, %v1673_v10 }
  0xc9   : > { %v756_v15 = vpop.permute.xlu0 %755 }
  0xca   : > { %v760_v28 = vpop.permute.xlu1 %759  ;;  %v786_v39 = vsel %vm777_vm7, %v1937_v45, %v756_v15 }
  0xcb   : > { %v792_v35 = vsel %vm777_vm7, %v1946_v49, %v760_v28  ;;  %v1369_v49 = vld [vmem:[%s2290_s23] ss:$0 sm:$0xff] }
  0xcd   : > { %v758_v17 = vpop.permute.xlu0 %757 }
  0xce   : > { %v789_v38 = vsel %vm777_vm7, %v711_v37, %v758_v17 }
  0xd0   : > { %v772_v36 = vpop.permute.xlu1 %771 }
  0xd1   : > { %v752_v21 = vpop.permute.xlu0 %751  ;;  %v804_v42 = vsel %vm796_vm9, %v789_v38, %v772_v36 }
  0xd2   : > { %v780_v26 = vsel %vm777_vm7, %v710_v23, %v752_v21 }
  0xd5   : > { %v754_v25 = vpop.permute.xlu0 %753 }
  0xd6   : > { %v783_v31 = vsel %vm777_vm7, %v1950_v52, %v754_v25 }
  0xd9   : > { %v766_v29 = vpop.permute.xlu0 %765 }
  0xda   : > { %v798_v30 = vsel %vm796_vm9, %v780_v26, %v766_v29 }
  0xdb   : > { %1409 = vmatprep.mubr.msk.bf16.mxu0 %vm823_vm8, %v798_v30 }
  0xdd   : > { %v768_v33 = vpop.permute.xlu0 %767 }
  0xde   : > { %v800_v34 = vsel %vm796_vm9, %v783_v31, %v768_v33 }
  0xdf   : > { %1410 = vmatmul.mubr.msk.bf16.vlgmr.msra.gmra.mrb[0].mxu0 %vm823_vm8, %v800_v34 }
  0xe2   : > { %v770_v40 = vpop.permute.xlu1 %769 }
  0xe3   : > { %v802_v41 = vsel %vm796_vm9, %v786_v39, %v770_v40 }
  0xe4   : > { %1413 = vmatprep.mubr.msk.bf16.mxu1 %vm823_vm8, %v802_v41 }
  0xe5   : > { %1414 = vmatmul.mubr.msk.bf16.vlgmr.msra.gmra.mrb[0].mxu1 %vm823_vm8, %v804_v42 }
  0xe6   : > { %v762_v43 = vpop.permute.xlu1 %761 }
  0xe7   : > { %v795_v45 = vsel %vm777_vm7, %v1956_v59, %v762_v43 }
  0xea   : > { %v774_v44 = vpop.permute.xlu1 %773 }
  0xeb   : > { %v806_v46 = vsel %vm796_vm9, %v792_v35, %v774_v44 }
  0xec   : > { %1417 = vmatprep.mubr.msk.bf16.mxu1 %vm823_vm8, %v806_v46 }
  0xee   : > { %v776_v47 = vpop.permute.xlu1 %775 }
  0xef   : > { %v808_v48 = vsel %vm796_vm9, %v795_v45, %v776_v47 }
  0xf0   : > { %1418 = vmatmul.mubr.msk.bf16.gmra.mrb[4].mxu1 %vm823_vm8, %v808_v48 }
 0x1b2   : > { %v1411_v50 = vpop.f32.mrb[0].mxu0 }
 0x1b3   : > { %v2015_v51 = vadd.f32 %v1411_v50, %v1369_v49  ;;  %v874_v52 = vpop.f32.mrb[1].mxu0 }
 0x1b4   : > { %v2017_v53 = vadd.f32 %v1369_v49, %v874_v52  ;;  %v1412_v54 = vpop.f32.mrb[2].mxu0 }
 0x1b5   : > { %v2019_v55 = vadd.f32 %v1412_v54, %v1369_v49  ;;  %v877_v56 = vpop.f32.mrb[3].mxu0 }
 0x1b6   : > { %v2021_v57 = vadd.f32 %v1369_v49, %v877_v56 }
 0x1b8   : > { %v1415_v58 = vpop.f32.mrb[0].mxu1 }
 0x1b9   : > { %v2023_v59 = vadd.f32 %v1415_v58, %v1369_v49  ;;  %v890_v60 = vpop.f32.mrb[1].mxu1 }
 0x1ba   : > { %v2025_v61 = vadd.f32 %v1369_v49, %v890_v60  ;;  %v1416_v62 = vpop.f32.mrb[2].mxu1 }
 0x1bb   : > { %v2027_v63 = vadd.f32 %v1416_v62, %v1369_v49  ;;  %v893_v0 = vpop.f32.mrb[3].mxu1 }
 0x1bc   : > { %v2029_v1 = vadd.f32 %v1369_v49, %v893_v0 }
 0x1c1   : > { %926 = sbr.rel (%p2008_p3) target bundleno = 456 (0x1c8), region = 175 }
 0x1c3   : > { %v1419_v2 = vpop.f32.mrb[4].mxu1 }
 0x1c4   : > { %v2031_v3 = vadd.f32 %v1419_v2, %v1369_v49  ;;  %v906_v4 = vpop.f32.mrb[5].mxu1 }
 0x1c5   : > { %v2033_v5 = vadd.f32 %v1369_v49, %v906_v4  ;;  %v1420_v6 = vpop.f32.mrb[6].mxu1 }
 0x1c6   : > { %v2035_v7 = vadd.f32 %v1420_v6, %v1369_v49  ;;  %v909_v8 = vpop.f32.mrb[7].mxu1 }
 0x1c7   : > { %v2037_v9 = vadd.f32 %v1369_v49, %v909_v8 }
 0x1c8 PF: > { %s2291_s20 = sld [smem:[#allocation11_spill]] }
 0x1ce   : > { %p1377_p4 = scmp.ne.s32.totalorder %s2291_s20, 0 }
 0x1cf   : > { %v934_v11 = vsel (!%p1377_p4), %vm796_vm9, %v2017_v53, 0.0  ;;  %v935_v12 = vsel (!%p1377_p4), %vm796_vm9, %v2021_v57, 0.0  ;;  %v937_v13 = vsel (!%p1377_p4), %vm796_vm9, %v2015_v51, 0.0  ;;  %v939_v15 = vsel (!%p1377_p4), %vm796_vm9, %v2019_v55, 0.0 }
 0x1d0   : > { %932 = sbr.rel (%p1377_p4) target bundleno = 504 (0x1f8), region = 179  ;;  %v936_v14 = vadd.f32 (!%p1377_p4), %v935_v12, %v934_v11  ;;  %v967_v17 = vmul.f32 (!%p1377_p4), %v2017_v53, %v2017_v53  ;;  %v941_v18 = vsel (!%p1377_p4), %vm796_vm9, %v2025_v61, 0.0  ;;  %v968_v19 = vmul.f32 (!%p1377_p4), %v2021_v57, %v2021_v57 }
 0x1d1   : > { %v969_v20 = vmul.f32 (!%p1377_p4), %v2015_v51, %v2015_v51  ;;  %v970_v22 = vmul.f32 (!%p1377_p4), %v2019_v55, %v2019_v55  ;;  %v943_v23 = vsel (!%p1377_p4), %vm796_vm9, %v2029_v1, 0.0  ;;  %v971_v24 = vmul.f32 (!%p1377_p4), %v2025_v61, %v2025_v61 }
 0x1d2   : > { %v938_v16 = vadd.f32 (!%p1377_p4), %v937_v13, %v936_v14  ;;  %v979_v26 = vsel (!%p1377_p4), %vm796_vm9, %v967_v17, 0.0  ;;  %v980_v27 = vsel (!%p1377_p4), %vm796_vm9, %v968_v19, 0.0  ;;  %v945_v29 = vsel (!%p1377_p4), %vm796_vm9, %v2023_v59, 0.0 }
 0x1d3   : > { %v982_v28 = vsel (!%p1377_p4), %vm796_vm9, %v969_v20, 0.0  ;;  %v981_v30 = vadd.f32 (!%p1377_p4), %v980_v27, %v979_v26  ;;  %v972_v32 = vmul.f32 (!%p1377_p4), %v2029_v1, %v2029_v1  ;;  %v984_v33 = vsel (!%p1377_p4), %vm796_vm9, %v970_v22, 0.0 }
 0x1d4   : > { %v940_v21 = vadd.f32 (!%p1377_p4), %v939_v15, %v938_v16  ;;  %v947_v34 = vsel (!%p1377_p4), %vm796_vm9, %v2027_v63, 0.0  ;;  %v973_v38 = vmul.f32 (!%p1377_p4), %v2023_v59, %v2023_v59  ;;  %v986_v39 = vsel (!%p1377_p4), %vm796_vm9, %v971_v24, 0.0 }
 0x1d5   : > { %v983_v36 = vadd.f32 (!%p1377_p4), %v982_v28, %v981_v30  ;;  %v949_v40 = vsel (!%p1377_p4), %vm796_vm9, %v2033_v5, 0.0  ;;  %v974_v43 = vmul.f32 (!%p1377_p4), %v2027_v63, %v2027_v63  ;;  %v988_v35 = vsel (!%p1377_p4), %vm796_vm9, %v972_v32, 0.0  ;;  %v966_v30 = vld [vmem:[#allocation3] sm:$0x1] (!%p1377_p4) }
 0x1d6   : > { %v942_v25 = vadd.f32 (!%p1377_p4), %v941_v18, %v940_v21  ;;  %v951_v44 = vsel (!%p1377_p4), %vm796_vm9, %v2037_v9, 0.0  ;;  %v975_v47 = vmul.f32 (!%p1377_p4), %v2033_v5, %v2033_v5  ;;  %v990_v48 = vsel (!%p1377_p4), %vm796_vm9, %v973_v38, 0.0 }
 0x1d7   : > { %v985_v41 = vadd.f32 %v984_v33, %v983_v36  ;;  %v953_v49 = vsel %vm796_vm9, %v2031_v3, 0.0  ;;  %v976_v54 = vmul.f32 %v2037_v9, %v2037_v9  ;;  %v992_v56 = vsel %vm796_vm9, %v974_v43, 0.0 }
 0x1d8   : > { %v944_v31 = vadd.f32 %v943_v23, %v942_v25  ;;  %v955_v58 = vsel %vm796_vm9, %v2035_v7, 0.0  ;;  %v977_v0 = vmul.f32 %v2031_v3, %v2031_v3  ;;  %v994_v2 = vsel %vm796_vm9, %v975_v47, 0.0  ;;  %v933_v23 = vld [vmem:[#allocation2] sm:$0x1] }
 0x1d9   : > { %v987_v46 = vadd.f32 %v986_v39, %v985_v41  ;;  %v978_v8 = vmul.f32 %v2035_v7, %v2035_v7  ;;  %v996_v10 = vsel %vm796_vm9, %v976_v54, 0.0  ;;  %vm964_vm11 = vcmask 57344  }
 0x1da   : > { %v946_v37 = vadd.f32 %v945_v29, %v944_v31  ;;  %v998_v13 = vsel %vm796_vm9, %v977_v0, 0.0 }
 0x1db   : > { %v989_v50 = vadd.f32 %v988_v35, %v987_v46  ;;  %v1000_v16 = vsel %vm796_vm9, %v978_v8, 0.0 }
 0x1dc   : > { %v948_v42 = vadd.f32 %v947_v34, %v946_v37 }
 0x1dd   : > { %v991_v60 = vadd.f32 %v990_v48, %v989_v50 }
 0x1de   : > { %v950_v45 = vadd.f32 %v949_v40, %v948_v42 }
 0x1df   : > { %v993_v4 = vadd.f32 %v992_v56, %v991_v60 }
 0x1e0   : > { %v952_v52 = vadd.f32 %v951_v44, %v950_v45 }
 0x1e1   : > { %v995_v11 = vadd.f32 %v994_v2, %v993_v4 }
 0x1e2   : > { %v954_v62 = vadd.f32 %v953_v49, %v952_v52 }
 0x1e3   : > { %v997_v14 = vadd.f32 %v996_v10, %v995_v11 }
 0x1e4   : > { %v956_v6 = vadd.f32 %v955_v58, %v954_v62 }
 0x1e5   : > { %v999_v17 = vadd.f32 %v998_v13, %v997_v14 }
 0x1e6   : > { %v957_v12 = vrot.slane %v956_v6, 4 }
 0x1e7   : > { %v1001_v19 = vadd.f32 %v1000_v16, %v999_v17 }
 0x1e8   : > { %v958_v15 = vadd.f32 %v957_v12, %v956_v6 }
 0x1e9   : > { %v1002_v21 = vrot.slane %v1001_v19, 4 }
 0x1ea   : > { %v959_v18 = vrot.slane %v958_v15, 2 }
 0x1eb   : > { %v1003_v24 = vadd.f32 %v1002_v21, %v1001_v19 }
 0x1ec   : > { %v960_v20 = vadd.f32 %v959_v18, %v958_v15 }
 0x1ed   : > { %v1004_v26 = vrot.slane %v1003_v24, 2 }
 0x1ee   : > { %v961_v22 = vrot.slane %v960_v20, 1 }
 0x1ef   : > { %v1005_v28 = vadd.f32 %v1004_v26, %v1003_v24 }
 0x1f0   : > { %v962_v25 = vadd.f32 %v961_v22, %v960_v20 }
 0x1f1   : > { %v1006_v29 = vrot.slane %v1005_v28, 1 }
 0x1f2   : > { %v963_v27 = vadd.f32 %v962_v25, %v933_v23 }
 0x1f3   : > { %v1007_v31 = vadd.f32 %v1006_v29, %v1005_v28 }
 0x1f4   : > { %965 = vst.msk [vmem:[#allocation2] sm:$0x1] %vm964_vm11, %v963_v27 }
 0x1f5   : > { %v1008_v32 = vadd.f32 %v1007_v31, %v966_v30 }
 0x1f7   : > { %1009 = vst.msk [vmem:[#allocation3] sm:$0x1] %vm964_vm11, %v1008_v32 }
 0x1f8 PF: > { %s2292_s30 = sld [smem:[#allocation11_spill]] }
 0x1fe   : > { %p1378_p6 = scmp.ne.s32.totalorder %s2292_s30, 1 }
 0x1ff   : > { %v1014_v33 = vld [vmem:[#allocation2] sm:$0x1] (!%p1378_p6)  ;;  %v1016_v34 = vld [vmem:[#allocation3] sm:$0x1] (!%p1378_p6)  ;;  %v1028_v41 = vlaneseq (!%p1378_p6)  ;;  %s2293_s5 = sld [smem:[#allocation17_spill]] (!%p1378_p6)  ;;  %s2294_s24 = sld [smem:[#allocation18_spill]] (!%p1378_p6) }
 0x200   : > { %1013 = sbr.rel (%p1378_p6) target bundleno = 583 (0x247), region = 183  ;;  %v1015_v36 = vmul.f32 (!%p1378_p6), 0.0052083335, %v1014_v33  ;;  %v1017_v37 = vmul.f32 (!%p1378_p6), 0.0052083335, %v1016_v34 }
 0x201   : > { %v1029_v42 = vshrl.u32 (!%p1378_p6), %v1028_v41, 7 }
 0x202   : > { %v1018_v38 = vmul.f32 (!%p1378_p6), %v1015_v36, %v1015_v36 }
 0x203   : > { %v1030_v35 = vsub.s32 (!%p1378_p6), 0, %v1029_v42 }
 0x204   : > { %v1019_v39 = vsub.f32 (!%p1378_p6), %v1017_v37, %v1018_v38 }
 0x205   : > { %v1022_v43 = vld [vmem:[%s2293_s5] sm:$0x1] (!%p1378_p6) }
 0x206   : > { %v1020_v40 = vadd.f32 (!%p1378_p6), 1e-05, %v1019_v39  ;;  %v1024_v45 = vld [vmem:[%s2294_s24] sm:$0x1] (!%p1378_p6) }
 0x208   : > { %1541 = vrsqrt.f32 %v1020_v40 }
 0x212   : > { %v1542_v44 = vpop.eup %1541 }
 0x213   : > { %v1023_v46 = vmul.f32 %v1542_v44, %v1022_v43 }
 0x215   : > { %v1025_v47 = vmul.f32 %v1023_v46, %v1015_v36  ;;  %v1031_v48 = vrot.slane %v1023_v46, %v1030_v35 }
 0x217   : > { %v1026_v49 = vsub.f32 %v1024_v45, %v1025_v47  ;;  %v1033_v50 = vmul.f32 %v1031_v48, %v2017_v53  ;;  %v1034_v52 = vmul.f32 %v1031_v48, %v2021_v57  ;;  %v1035_v54 = vmul.f32 %v1031_v48, %v2015_v51 }
 0x218   : > { %v1036_v56 = vmul.f32 %v1031_v48, %v2019_v55  ;;  %v1037_v58 = vmul.f32 %v1031_v48, %v2025_v61  ;;  %v1038_v60 = vmul.f32 %v1031_v48, %v2029_v1  ;;  %v1039_v0 = vmul.f32 %v1031_v48, %v2023_v59 }
 0x219   : > { %v1049_v62 = vrot.slane %v1026_v49, %v1030_v35  ;;  %v1040_v2 = vmul.f32 %v1031_v48, %v2027_v63  ;;  %v1041_v59 = vmul.f32 %v1031_v48, %v2033_v5  ;;  %v1042_v12 = vmul.f32 %v1031_v48, %v2037_v9 }
 0x21a   : > { %v1043_v16 = vmul.f32 %v1031_v48, %v2031_v3  ;;  %v1044_v5 = vmul.f32 %v1031_v48, %v2035_v7 }
 0x21b   : > { %v1051_v4 = vadd.f32 %v1049_v62, %v1033_v50  ;;  %v2120_v6 = vadd.f32 %v1049_v62, %v1034_v52  ;;  %v2122_v8 = vadd.f32 %v1049_v62, %v1035_v54  ;;  %v2124_v53 = vadd.f32 %v1049_v62, %v1036_v56 }
 0x21c   : > { %v2126_v57 = vadd.f32 %v1049_v62, %v1037_v58  ;;  %v2128_v51 = vadd.f32 %v1049_v62, %v1038_v60  ;;  %v2131_v1 = vadd.f32 %v1049_v62, %v1039_v0  ;;  %v2136_v11 = vadd.f32 %v1049_v62, %v1040_v2 }
 0x21d   : > { %v1075_v55 = vmin.f32 %v1051_v4, 0.0  ;;  %v1076_v61 = vmin.f32 %v2120_v6, 0.0  ;;  %v1077_v63 = vmin.f32 %v2122_v8, 0.0  ;;  %v1078_v10 = vmin.f32 %v2124_v53, 0.0 }
 0x21e   : > { %v1079_v15 = vmin.f32 %v2126_v57, 0.0  ;;  %v1080_v19 = vmin.f32 %v2128_v51, 0.0  ;;  %v1081_v21 = vmin.f32 %v2131_v1, 0.0  ;;  %v1082_v9 = vmin.f32 %v2136_v11, 0.0 }
 0x21f   : > { %v1087_v13 = vmul.f32 1.442695, %v1075_v55  ;;  %v1089_v14 = vmul.f32 1.442695, %v1076_v61  ;;  %v1091_v17 = vmul.f32 1.442695, %v1077_v63  ;;  %v2145_v24 = vadd.f32 %v1049_v62, %v1041_v59 }
 0x220   : > { %v1093_v18 = vmul.f32 1.442695, %v1078_v10  ;;  %v1095_v20 = vmul.f32 1.442695, %v1079_v15  ;;  %v1097_v22 = vmul.f32 1.442695, %v1080_v19  ;;  %v2147_v25 = vadd.f32 %v1049_v62, %v1042_v12 }
 0x221   : > { %1543 = vpow2.f32 %v1087_v13  ;;  %v1099_v23 = vmul.f32 1.442695, %v1081_v21  ;;  %v1101_v3 = vmul.f32 1.442695, %v1082_v9  ;;  %v2149_v26 = vadd.f32 %v1049_v62, %v1043_v16 }
 0x222   : > { %1545 = vpow2.f32 %v1089_v14  ;;  %v2151_v27 = vadd.f32 %v1049_v62, %v1044_v5  ;;  %v1083_v7 = vmin.f32 %v2145_v24, 0.0  ;;  %v1084_v28 = vmin.f32 %v2147_v25, 0.0 }
 0x223   : > { %1547 = vpow2.f32 %v1091_v17  ;;  %v1085_v29 = vmin.f32 %v2149_v26, 0.0  ;;  %vm1063_vm12 = vcmp.gt.f32.partialorder %v1051_v4, 0.0  ;;  %vm1064_vm13 = vcmp.gt.f32.partialorder %v2120_v6, 0.0 }
 0x224   : > { %1549 = vpow2.f32 %v1093_v18  ;;  %v1103_v30 = vmul.f32 1.442695, %v1083_v7  ;;  %v1086_v31 = vmin.f32 %v2151_v27, 0.0  ;;  %v1105_v32 = vmul.f32 1.442695, %v1084_v28 }
 0x225   : > { %1551 = vpow2.f32 %v1095_v20  ;;  %v1107_v33 = vmul.f32 1.442695, %v1085_v29  ;;  %vm1065_vm14 = vcmp.gt.f32.partialorder %v2122_v8, 0.0  ;;  %vm1066_vm15 = vcmp.gt.f32.partialorder %v2124_v53, 0.0 }
 0x226   : > { %1553 = vpow2.f32 %v1097_v22  ;;  %v1109_v34 = vmul.f32 1.442695, %v1086_v31  ;;  %vm1067_vm0 = vcmp.gt.f32.partialorder %v2126_v57, 0.0  ;;  %vm1068_vm1 = vcmp.gt.f32.partialorder %v2128_v51, 0.0 }
 0x227   : > { %1555 = vpow2.f32 %v1099_v23  ;;  %vm1069_vm2 = vcmp.gt.f32.partialorder %v2131_v1, 0.0  ;;  %vm1070_vm3 = vcmp.gt.f32.partialorder %v2136_v11, 0.0  ;;  %vm1071_vm4 = vcmp.gt.f32.partialorder %v2145_v24, 0.0 }
 0x228   : > { %1557 = vpow2.f32 %v1101_v3  ;;  %vm1072_vm5 = vcmp.gt.f32.partialorder %v2147_v25, 0.0  ;;  %vm1073_vm6 = vcmp.gt.f32.partialorder %v2149_v26, 0.0  ;;  %vm1074_vm7 = vcmp.gt.f32.partialorder %v2151_v27, 0.0 }
 0x229   : > { %1559 = vpow2.f32 %v1103_v30 }
 0x22a   : > { %1561 = vpow2.f32 %v1105_v32 }
 0x22b   : > { %v1544_v36 = vpop.eup %1543  ;;  %1563 = vpow2.f32 %v1107_v33 }
 0x22c   : > { %v1546_v37 = vpop.eup %1545  ;;  %v1379_v38 = vadd.f32 -1.0, %v1544_v36  ;;  %1565 = vpow2.f32 %v1109_v34 }
 0x22d   : > { %v1548_v39 = vpop.eup %1547  ;;  %v1380_v40 = vadd.f32 -1.0, %v1546_v37 }
 0x22e   : > { %v1550_v41 = vpop.eup %1549  ;;  %v1123_v42 = vsel %vm1063_vm12, %v1051_v4, %v1379_v38  ;;  %v1381_v43 = vadd.f32 -1.0, %v1548_v39 }
 0x22f   : > { %v1552_v35 = vpop.eup %1551  ;;  %1135 = vst.msk [vmem:[#allocation4] sm:$0xff] %vm796_vm9, %v1123_v42  ;;  %v1124_v44 = vsel %vm1064_vm13, %v2120_v6, %v1380_v40  ;;  %v1382_v46 = vadd.f32 -1.0, %v1550_v41 }
 0x230   : > { %v1554_v45 = vpop.eup %1553  ;;  %1136 = vst.msk [vmem:[#allocation4 + $0x8] sm:$0xff] %vm796_vm9, %v1124_v44  ;;  %v1125_v47 = vsel %vm1065_vm14, %v2122_v8, %v1381_v43  ;;  %v1383_v48 = vadd.f32 -1.0, %v1552_v35 }
 0x231   : > { %v1556_v49 = vpop.eup %1555  ;;  %1137 = vst.msk [vmem:[#allocation4 + $0x10] sm:$0xff] %vm796_vm9, %v1125_v47  ;;  %v1126_v50 = vsel %vm1066_vm15, %v2124_v53, %v1382_v46  ;;  %v1384_v52 = vadd.f32 -1.0, %v1554_v45 }
 0x232   : > { %v1558_v54 = vpop.eup %1557  ;;  %1138 = vst.msk [vmem:[#allocation4 + $0x18] sm:$0xff] %vm796_vm9, %v1126_v50  ;;  %v1127_v56 = vsel %vm1067_vm0, %v2126_v57, %v1383_v48  ;;  %v1385_v58 = vadd.f32 -1.0, %v1556_v49 }
 0x233   : > { %v1560_v60 = vpop.eup %1559  ;;  %1139 = vst.msk [vmem:[#allocation4 + $0x20] sm:$0xff] %vm796_vm9, %v1127_v56  ;;  %v1128_v62 = vsel %vm1068_vm1, %v2128_v51, %v1384_v52  ;;  %v1386_v0 = vadd.f32 -1.0, %v1558_v54 }
 0x234   : > { %v1562_v2 = vpop.eup %1561  ;;  %1140 = vst.msk [vmem:[#allocation4 + $0x28] sm:$0xff] %vm796_vm9, %v1128_v62  ;;  %v1129_v4 = vsel %vm1069_vm2, %v2131_v1, %v1385_v58  ;;  %v1387_v6 = vadd.f32 -1.0, %v1560_v60 }
 0x235   : > { %v1564_v8 = vpop.eup %1563  ;;  %1141 = vst.msk [vmem:[#allocation4 + $0x30] sm:$0xff] %vm796_vm9, %v1129_v4  ;;  %v1130_v53 = vsel %vm1070_vm3, %v2136_v11, %v1386_v0  ;;  %v1388_v57 = vadd.f32 -1.0, %v1562_v2 }
 0x236   : > { %v1566_v51 = vpop.eup %1565  ;;  %1142 = vst.msk [vmem:[#allocation4 + $0x38] sm:$0xff] %vm796_vm9, %v1130_v53  ;;  %v1131_v55 = vsel %vm1071_vm4, %v2145_v24, %v1387_v6  ;;  %v1389_v61 = vadd.f32 -1.0, %v1564_v8 }
 0x237   : > { %1143 = vst.msk [vmem:[#allocation4 + $0x40] sm:$0xff] %vm796_vm9, %v1131_v55  ;;  %v1132_v1 = vsel %vm1072_vm5, %v2147_v25, %v1388_v57  ;;  %v1390_v59 = vadd.f32 -1.0, %v1566_v51 }
 0x238   : > { %1144 = vst.msk [vmem:[#allocation4 + $0x48] sm:$0xff] %vm796_vm9, %v1132_v1  ;;  %v1133_v63 = vsel %vm1073_vm6, %v2149_v26, %v1389_v61  ;;  %v1147_v10 = vld [vmem:[#allocation4] ss:$3 sm:$0xff]  ;;  %v1155_v11 = vld [vmem:[#allocation4 + $0x1] ss:$3 sm:$0xff] }
 0x239   : > { %1145 = vst.msk [vmem:[#allocation4 + $0x50] sm:$0xff] %vm796_vm9, %v1133_v63  ;;  %v1134_v12 = vsel %vm1074_vm7, %v2151_v27, %v1390_v59  ;;  %v1170_v13 = vmax.f32 %v1147_v10, %v1155_v11  ;;  %v1163_v14 = vld [vmem:[#allocation4 + $0x2] ss:$3 sm:$0xff] }
 0x23a   : > { %1146 = vst.msk [vmem:[#allocation4 + $0x58] sm:$0xff] %vm796_vm9, %v1134_v12 }
 0x23b   : > { %v1174_v15 = vmax.f32 %v1170_v13, %v1163_v14  ;;  %v1149_v16 = vld [vmem:[#allocation4 + $0x18] ss:$3 sm:$0xff]  ;;  %v1157_v17 = vld [vmem:[#allocation4 + $0x19] ss:$3 sm:$0xff]  ;;  %v1165_v19 = vld [vmem:[#allocation4 + $0x1a] ss:$3 sm:$0xff] }
 0x23c   : > { %v1171_v18 = vmax.f32 %v1149_v16, %v1157_v17 }
 0x23d   : > { %1178 = vst.msk [vmem:[%s2040_s19] sm:$0xff] %vm796_vm9, %v1174_v15 }
 0x23e   : > { %v1175_v5 = vmax.f32 %v1171_v18, %v1165_v19  ;;  %v1151_v20 = vld [vmem:[#allocation4 + $0x30] ss:$3 sm:$0xff]  ;;  %v1159_v21 = vld [vmem:[#allocation4 + $0x31] ss:$3 sm:$0xff]  ;;  %v1167_v9 = vld [vmem:[#allocation4 + $0x32] ss:$3 sm:$0xff] }
 0x23f   : > { %v1172_v22 = vmax.f32 %v1151_v20, %v1159_v21 }
 0x240   : > { %1179 = vst.msk [vmem:[%s2040_s19 + $0x8] sm:$0xff] %vm796_vm9, %v1175_v5 }
 0x241   : > { %v1176_v23 = vmax.f32 %v1172_v22, %v1167_v9  ;;  %v1153_v24 = vld [vmem:[#allocation4 + $0x48] ss:$3 sm:$0xff]  ;;  %v1161_v25 = vld [vmem:[#allocation4 + $0x49] ss:$3 sm:$0xff]  ;;  %v1169_v26 = vld [vmem:[#allocation4 + $0x4a] ss:$3 sm:$0xff] }
 0x242   : > { %v1173_v3 = vmax.f32 %v1153_v24, %v1161_v25 }
 0x243   : > { %1180 = vst.msk [vmem:[%s2040_s19 + $0x10] sm:$0xff] %vm796_vm9, %v1176_v23 }
 0x244   : > { %v1177_v27 = vmax.f32 %v1173_v3, %v1169_v26 }
 0x246   : > { %1181 = vst.msk [vmem:[%s2040_s19 + $0x18] sm:$0xff] %vm796_vm9, %v1177_v27 }
 0x247 PF: > { %1188 = sbr.rel (!%p1852_p7) target bundleno = 596 (0x254), region = 187  ;;  %s2295_s10 = sld [smem:[#allocation11_spill]] (%p1852_p7)  ;;  %v1226_v7 = vld [vmem:[%s2040_s19] sm:$0xff] (%p1852_p7)  ;;  %v1228_v28 = vld [vmem:[%s2040_s19 + $0x8] sm:$0xff] (%p1852_p7) }
 0x248   : > { %s2296_s14 = sld [smem:[#allocation10_spill]] (%p1852_p7)  ;;  %s2297_s22 = sld [smem:[#allocation19_spill]] (%p1852_p7) }
 0x24a   : > { %v1230_v29 = vld [vmem:[%s2040_s19 + $0x10] sm:$0xff] (%p1852_p7) }
 0x24d   : > { %v1232_v30 = vld [vmem:[%s2040_s19 + $0x18] sm:$0xff] (%p1852_p7) }
 0x24e   : > { %s1189_s17 = smul.u32 %s2296_s14, %s2295_s10 }
 0x250   : > { %s1399_s15 = sshll.u32 %s1189_s17, 4 }
 0x251   : > { %s1192_s23 = scalar_lea.vmem %s2297_s22, %s1399_s15 }
 0x252   : > { %1227 = vst [vmem:[%s1192_s23] sm:$0xff] %v1226_v7  ;;  %1229 = vst [vmem:[%s1192_s23 + $0x8] sm:$0xff] %v1228_v28 }
 0x253   : > { %1231 = vst [vmem:[%s1192_s23 + $0x20] sm:$0xff] %v1230_v29  ;;  %1233 = vst [vmem:[%s1192_s23 + $0x28] sm:$0xff] %v1232_v30 }
 0x254 PF: > { %s17_s13 = sadd.s32 1, %s1669_s13   ;;  %s2299_s19 = sld [smem:[#allocation13_spill]] }
 0x255   : > { %p2211_p7 = scmp.ge.s32.totalorder %s17_s13, 6   ;;  %s2300_s10 = sld [smem:[#allocation12_spill]] }
 0x256   : > { %s2302_s24 = smov %s1625_s25  ;;  %s2303_s25 = smov %s1850_s7 }
 0x257   : > { %s2304_s26 = smov %s1633_s27  ;;  %s2305_s27 = smov %s1843_s3 }
 0x258   : > { %s2306_s28 = smov %s1641_s29  ;;  %s2307_s29 = smov %s1826_s4 }
 0x259   : > { %s2308_s30 = smov %s1649_s8  ;;  %s2310_s9 = smov %s1661_s11 }
 0x25a   : > { %s2309_s8 = smov %s2299_s19  ;;  %s2311_s11 = smov %s1789_s18 }
 0x25b   : > { %s2312_s12 = smov %s2316_s16  ;;  %16 = sbr.rel (!%p2211_p7) target bundleno = 14 (0xe), region = 283 }

</bundles_post_ra>
